<compile_context>
chip_gen: v5e
topology: v5e:2x2
jax: 0.10.0
libtpu: 0.0.40
codegen_flags: <defaults>
</compile_context>

<pallas_src>
import jax
import jax.numpy as jnp
from jax import lax
from jax.experimental import pallas as pl
from jax.experimental.pallas import tpu as pltpu

EPS = 1e-6


def _softplus(logits):
    # BCE-with-logits vs. all-zero targets == softplus(logits), stable form.
    return jnp.maximum(logits, 0.0) + jnp.log1p(jnp.exp(-jnp.abs(logits)))


def _inv_norm(sq):
    # 1 / max(sqrt(sq), EPS) without a divide: rsqrt (EUP slot) + clamp.
    return jnp.minimum(lax.rsqrt(sq), 1.0 / EPS)


def _neg_term(x, neg_ref, nx):
    """softplus(cos_sim(x, neg) / temp) per row; nx = inv_temp / max(||x||, eps)."""
    neg = neg_ref[...].astype(jnp.float32)
    w12 = jnp.sum(x * neg, axis=-1, keepdims=True)
    ss = jnp.sum(neg * neg, axis=-1, keepdims=True)
    return _softplus(w12 * nx * _inv_norm(ss))


def _make_kernel(inv_temp, cast_x):
    """grid = (row_tiles, N); axis 1 (negatives) is the reduction axis.

    x_ref:   (TR, D)  resident across the whole negatives loop
    neg_ref: (TR, D)  one negative candidate per step (N axis squeezed)
    out_ref: (TR, 1)  per-row accumulated loss (resident accumulator)
    nx_ref:  (TR, 1)  scratch: inv_temp / max(||x||, eps), hoisted at s == 0
    xf_ref:  (TR, D)  scratch: f32 copy of x (only when inputs are not f32)
    """
    if cast_x:
        def kernel(x_ref, neg_ref, out_ref, nx_ref, xf_ref):
            @pl.when(pl.program_id(1) == 0)
            def _():
                xf = x_ref[...].astype(jnp.float32)
                xf_ref[...] = xf
                nx_ref[...] = inv_temp * _inv_norm(
                    jnp.sum(xf * xf, axis=-1, keepdims=True))
                out_ref[...] = jnp.zeros_like(out_ref)

            out_ref[...] += _neg_term(xf_ref[...], neg_ref, nx_ref[...])
    else:
        def kernel(x_ref, neg_ref, out_ref, nx_ref):
            @pl.when(pl.program_id(1) == 0)
            def _():
                xf = x_ref[...]
                nx_ref[...] = inv_temp * _inv_norm(
                    jnp.sum(xf * xf, axis=-1, keepdims=True))
                out_ref[...] = jnp.zeros_like(out_ref)

            out_ref[...] += _neg_term(x_ref[...], neg_ref, nx_ref[...])

    return kernel


def _round_up(v, m):
    return ((v + m - 1) // m) * m


def _cdiv(a, b):
    return -(-a // b)


def _vmem_capacity_bytes():
    try:
        cap = int(pltpu.get_tpu_info().vmem_capacity_bytes)
        if cap > 0:
            return cap
    except Exception:
        pass
    return 64 * 2 ** 20  # conservative default (v7x per-TC VMEM)


def _pick_row_tile(rows, d, in_itemsize, cast_x, budget):
    """Pick the row-tile size.

    Goals (perf review): multi-MiB negative blocks to amortize the ~0.35 us
    per-grid-step overhead, a VMEM footprint (incl. f32 temporaries) under
    `budget`, sublane-multiple tiles for the input dtype, and an even tile
    count so the 'parallel' row axis balances across v7x's two TensorCores.
    """
    sub = 8 if in_itemsize >= 4 else (16 if in_itemsize == 2 else 32)
    if rows <= sub:
        return rows  # tiny problem: one full-extent tile

    # Bytes per row of VMEM working set: 3 negative pipeline buffers + 1
    # resident x buffer (+ f32 copy of x when casting) + roughly one
    # full-tile f32 elementwise temporary for the compiler.
    per_row = d * (3 * in_itemsize + in_itemsize + (4 if cast_x else 0) + 4)
    tr = (budget // per_row) // sub * sub
    tr = max(sub, min(tr, _round_up(rows, sub)))

    n_tiles = _cdiv(rows, tr)
    min_blk = 2 << 20  # keep negative blocks >= 2 MiB when rebalancing
    if n_tiles == 1:
        tr_half = _round_up(_cdiv(rows, 2), sub)
        if tr_half * d * in_itemsize >= min_blk:
            tr = tr_half
    elif n_tiles % 2 == 1:
        tr_even = _round_up(_cdiv(rows, n_tiles + 1), sub)
        if tr_even * d * in_itemsize >= min_blk:
            tr = tr_even
    return tr


def contrastive_loss(x, positives, negatives, logit_temp=0.1):
    """x, positives: (B, T, D); negatives: (N, B, T, D). bf16 inputs also OK."""
    B, T, D = x.shape
    N = negatives.shape[0]
    R = B * T
    inv_temp = 1.0 / float(logit_temp)

    # Collapse (B, T) -> rows: (8,128)-friendly 2-D blocks, no data movement.
    x2 = x.reshape(R, D)
    p2 = positives.reshape(R, D)
    n3 = negatives.reshape(N, R, D)

    in_itemsize = jnp.dtype(x.dtype).itemsize
    cast_x = jnp.dtype(x.dtype) != jnp.dtype(jnp.float32)

    vmem_cap = _vmem_capacity_bytes()
    budget = int(vmem_cap * 0.45)
    vmem_limit = int(vmem_cap * 3 // 4)  # headroom below physical VMEM (v7x)

    tr = _pick_row_tile(R, D, in_itemsize, cast_x, budget)
    grid = (_cdiv(R, tr), N)

    kernel = _make_kernel(inv_temp, cast_x)
    scratch = [pltpu.VMEM((tr, 1), jnp.float32)]
    if cast_x:
        scratch.append(pltpu.VMEM((tr, D), jnp.float32))

    def run(use_buffer_hints):
        x_kw = {"pipeline_mode": pl.Buffered(1)} if use_buffer_hints else {}
        neg_kw = {"pipeline_mode": pl.Buffered(3)} if use_buffer_hints else {}
        call = pl.pallas_call(
            kernel,
            out_shape=jax.ShapeDtypeStruct((R, 1), jnp.float32),
            grid_spec=pltpu.PrefetchScalarGridSpec(
                num_scalar_prefetch=0,
                grid=grid,
                in_specs=[
                    # x: one row tile, resident across the whole N loop (the
                    # block index is invariant in s -> DMA'd once per row tile).
                    pl.BlockSpec((tr, D), lambda r, s: (r, 0), **x_kw),
                    # negatives: one candidate row-tile per step (N squeezed).
                    pl.BlockSpec((pl.Squeezed(), tr, D),
                                 lambda r, s: (s, r, 0), **neg_kw),
                ],
                out_specs=pl.BlockSpec((tr, 1), lambda r, s: (r, 0)),
                scratch_shapes=scratch,
            ),
            compiler_params=pltpu.CompilerParams(
                dimension_semantics=("parallel", "arbitrary"),
                vmem_limit_bytes=vmem_limit,
            ),
        )
        return call(x2, n3)

    try:
        per_row = run(True)
    except Exception:
        # TODO(synk): pipeline_mode buffer-count hints unsupported on this
        # JAX/Mosaic version; fall back to default double-buffering.
        per_row = run(False)

    # Positive-pair term: 1/(N+1) of the traffic, computed with plain jnp so
    # the kernel hot loop stays branch-free and its VMEM goes to negatives.
    xf = x2.astype(jnp.float32)
    pf = p2.astype(jnp.float32)
    nx = jnp.maximum(jnp.sqrt(jnp.sum(xf * xf, axis=-1)), EPS)
    npos = jnp.maximum(jnp.sqrt(jnp.sum(pf * pf, axis=-1)), EPS)
    pos_logits = jnp.sum(xf * pf, axis=-1) / (nx * npos) * inv_temp
    pos_loss = jnp.sum(_softplus(pos_logits))

    # Final reduction and /B outside the kernel: keeps the hot loop free of
    # cross-lane scalarization and improves summation accuracy.
    return (jnp.sum(per_row) + pos_loss) / B


def _reference(x, positives, negatives, logit_temp=0.1):
    samples = jnp.concatenate([positives[None], negatives], axis=0).astype(jnp.float32)
    xf = x.astype(jnp.float32)
    w12 = jnp.sum(xf * samples, axis=-1)
    nx = jnp.maximum(jnp.sqrt(jnp.sum(xf * xf, axis=-1)), EPS)
    ns = jnp.maximum(jnp.sqrt(jnp.sum(samples * samples, axis=-1)), EPS)
    logits = w12 / (nx * ns) / logit_temp
    loss = jnp.maximum(logits, 0.0) + jnp.log1p(jnp.exp(-jnp.abs(logits)))
    return jnp.sum(loss) / x.shape[0]


if __name__ == "__main__":
    key = jax.random.PRNGKey(0)
    kx, kp, kn = jax.random.split(key, 3)

    B, T, D, N = 2, 8, 32, 4
    x = jax.random.normal(kx, (B, T, D), dtype=jnp.float32)
    positives = jax.random.normal(kp, (B, T, D), dtype=jnp.float32)
    negatives = jax.random.normal(kn, (N, B, T, D), dtype=jnp.float32)

    loss = jax.block_until_ready(contrastive_loss(x, positives, negatives))
    ref = jax.block_until_ready(_reference(x, positives, negatives))
    assert jnp.allclose(loss, ref, rtol=1e-5, atol=1e-5), (loss, ref)

    # bf16 inputs exercise the hoisted-cast (f32 scratch) path.
    xb, pb, nb = (a.astype(jnp.bfloat16) for a in (x, positives, negatives))
    loss_b = jax.block_until_ready(contrastive_loss(xb, pb, nb))
    ref_b = jax.block_until_ready(_reference(xb, pb, nb))
    assert jnp.allclose(loss_b, ref_b, rtol=1e-4, atol=1e-4), (loss_b, ref_b)

    print("KERNEL_OK")
</pallas_src>

<mosaic_0001>
module attributes {stable_mosaic.version = 11 : i64} {
  func.func @kernel(%arg0: i32, %arg1: i32, %arg2: memref<16x32xf32, #tpu.memory_space<vmem>>, %arg3: memref<1x16x32xf32, #tpu.memory_space<vmem>>, %arg4: memref<16x1xf32, #tpu.memory_space<vmem>>, %arg5: memref<16x1xf32, #tpu.memory_space<vmem>>) attributes {dimension_semantics = [#tpu.dimension_semantics<parallel>, #tpu.dimension_semantics<arbitrary>], iteration_bounds = array<i64: 1, 4>, scalar_prefetch = 0 : i64, scratch_operands = 1 : i64, tpu.core_type = #tpu.core_type<tc>, window_params = [{transform_indices = @transform_0, window_bounds = array<i64: 16, 32>}, {transform_indices = @transform_1, window_bounds = array<i64: 1, 16, 32>}, {transform_indices = @transform_2, window_bounds = array<i64: 16, 1>}]} {
    %c0_i32 = arith.constant 0 : i32
    %0 = arith.cmpi eq, %arg1, %c0_i32 : i32
    %1 = arith.extui %0 : i1 to i32
    %c0_i32_0 = arith.constant 0 : i32
    %2 = arith.cmpi ne, %1, %c0_i32_0 : i32
    scf.if %2 {
      %c0_15 = arith.constant 0 : index
      %c0_16 = arith.constant 0 : index
      %29 = vector.load %arg2[%c0_15, %c0_16] : memref<16x32xf32, #tpu.memory_space<vmem>>, vector<16x32xf32>
      %30 = arith.mulf %29, %29 : vector<16x32xf32>
      %cst_17 = arith.constant dense<0.000000e+00> : vector<16xf32>
      %31 = vector.multi_reduction <add>, %30, %cst_17 [1] : vector<16x32xf32> to vector<16xf32>
      %32 = vector.shape_cast %31 : vector<16xf32> to vector<16x1xf32>
      %33 = math.rsqrt %32 : vector<16x1xf32>
      %cst_18 = arith.constant 1.000000e+06 : f32
      %34 = vector.broadcast %cst_18 : f32 to vector<16x1xf32>
      %35 = arith.minimumf %33, %34 : vector<16x1xf32>
      %cst_19 = arith.constant 1.000000e+01 : f32
      %36 = vector.broadcast %cst_19 : f32 to vector<16x1xf32>
      %37 = arith.mulf %36, %35 : vector<16x1xf32>
      %c0_20 = arith.constant 0 : index
      %c0_21 = arith.constant 0 : index
      %38 = vector.load %arg5[%c0_20, %c0_21] : memref<16x1xf32, #tpu.memory_space<vmem>>, vector<16x1xf32>
      tpu.vector_store %arg5[%c0_20, %c0_21], %37 {strides = array<i32>} : memref<16x1xf32, #tpu.memory_space<vmem>>, vector<16x1xf32>,
      %cst_22 = arith.constant 0.000000e+00 : f32
      %39 = vector.broadcast %cst_22 : f32 to vector<16x1xf32>
      %c0_23 = arith.constant 0 : index
      %c0_24 = arith.constant 0 : index
      %40 = vector.load %arg4[%c0_23, %c0_24] : memref<16x1xf32, #tpu.memory_space<vmem>>, vector<16x1xf32>
      tpu.vector_store %arg4[%c0_23, %c0_24], %39 {strides = array<i32>} : memref<16x1xf32, #tpu.memory_space<vmem>>, vector<16x1xf32>,
    } else {
    }
    %c0 = arith.constant 0 : index
    %c0_1 = arith.constant 0 : index
    %3 = vector.load %arg4[%c0, %c0_1] : memref<16x1xf32, #tpu.memory_space<vmem>>, vector<16x1xf32>
    %c0_2 = arith.constant 0 : index
    %c0_3 = arith.constant 0 : index
    %4 = vector.load %arg2[%c0_2, %c0_3] : memref<16x32xf32, #tpu.memory_space<vmem>>, vector<16x32xf32>
    %c0_4 = arith.constant 0 : index
    %c0_5 = arith.constant 0 : index
    %5 = vector.load %arg5[%c0_4, %c0_5] : memref<16x1xf32, #tpu.memory_space<vmem>>, vector<16x1xf32>
    %c0_6 = arith.constant 0 : index
    %c0_7 = arith.constant 0 : index
    %c0_8 = arith.constant 0 : index
    %6 = vector.load %arg3[%c0_6, %c0_7, %c0_8] : memref<1x16x32xf32, #tpu.memory_space<vmem>>, vector<1x16x32xf32>
    %7 = vector.shape_cast %6 : vector<1x16x32xf32> to vector<16x32xf32>
    %8 = arith.mulf %4, %7 : vector<16x32xf32>
    %cst = arith.constant dense<0.000000e+00> : vector<16xf32>
    %9 = vector.multi_reduction <add>, %8, %cst [1] : vector<16x32xf32> to vector<16xf32>
    %10 = vector.shape_cast %9 : vector<16xf32> to vector<16x1xf32>
    %11 = arith.mulf %7, %7 : vector<16x32xf32>
    %cst_9 = arith.constant dense<0.000000e+00> : vector<16xf32>
    %12 = vector.multi_reduction <add>, %11, %cst_9 [1] : vector<16x32xf32> to vector<16xf32>
    %13 = vector.shape_cast %12 : vector<16xf32> to vector<16x1xf32>
    %14 = arith.mulf %10, %5 : vector<16x1xf32>
    %15 = math.rsqrt %13 : vector<16x1xf32>
    %cst_10 = arith.constant 1.000000e+06 : f32
    %16 = vector.broadcast %cst_10 : f32 to vector<16x1xf32>
    %17 = arith.minimumf %15, %16 : vector<16x1xf32>
    %18 = arith.mulf %14, %17 : vector<16x1xf32>
    %cst_11 = arith.constant 0.000000e+00 : f32
    %19 = vector.broadcast %cst_11 : f32 to vector<16x1xf32>
    %20 = arith.maximumf %18, %19 : vector<16x1xf32>
    %21 = math.absf %18 : vector<16x1xf32>
    %cst_12 = arith.constant 0.000000e+00 : f32
    %22 = vector.broadcast %cst_12 : f32 to vector<16x1xf32>
    %23 = arith.subf %22, %21 : vector<16x1xf32>
    %24 = math.exp %23 : vector<16x1xf32>
    %25 = math.log1p %24 : vector<16x1xf32>
    %26 = arith.addf %20, %25 : vector<16x1xf32>
    %27 = arith.addf %3, %26 : vector<16x1xf32>
    %c0_13 = arith.constant 0 : index
    %c0_14 = arith.constant 0 : index
    %28 = vector.load %arg4[%c0_13, %c0_14] : memref<16x1xf32, #tpu.memory_space<vmem>>, vector<16x1xf32>
    tpu.vector_store %arg4[%c0_13, %c0_14], %27 {strides = array<i32>} : memref<16x1xf32, #tpu.memory_space<vmem>>, vector<16x1xf32>,
    return
  }
  func.func @transform_0(%arg0: i32, %arg1: i32) -> (i32, i32) {
    %c0_i32 = arith.constant 0 : i32
    %c0_i32_0 = arith.constant 0 : i32
    return %arg0, %c0_i32 : i32, i32
  }
  func.func @transform_1(%arg0: i32, %arg1: i32) -> (i32, i32, i32) {
    %c0_i32 = arith.constant 0 : i32
    %c0_i32_0 = arith.constant 0 : i32
    return %arg1, %arg0, %c0_i32 : i32, i32, i32
  }
  func.func @transform_2(%arg0: i32, %arg1: i32) -> (i32, i32) {
    %c0_i32 = arith.constant 0 : i32
    %c0_i32_0 = arith.constant 0 : i32
    return %arg0, %c0_i32 : i32, i32
  }
}

</mosaic_0001>

<bundles_post_ra>
// kernel: tpu_custom_call.1
= control target key start
LH: loop header
LB: loop body
LE: loop exit
PB: predicated region body
PF: predicated region fallthrough
CT: control target
= control target key end

     0   :  { %7 = vsyncpa [#allocation4], 0  ;;  %s802_s0 = inlined_call_operand.hbm [shape: f32[16,32], index: 0, kind: input, shape index: {}]   ;;  %s803_s1 = inlined_call_operand.hbm [shape: f32[4,16,32], index: 1, kind: input, shape index: {}]   ;;  %s804_s2 = inlined_call_operand.vmem [shape: f32[16,1], index: 2, kind: output, shape index: {}]  }
   0x1   :  { %8 = vsyncpa [#allocation6], 0 }
   0x2   :  { %10 = vsyncpa [#allocation6 + $0x1], 0  ;;  %s666_s9 = smov 0   ;;  %s668_s10 = smov 0  }
   0x3   :  { %s670_s11 = smov 0   ;;  %s672_s12 = smov 0  }
   0x4   :  { %s674_s13 = smov 0   ;;  %s676_s14 = smov 0  }
   0x5 LB: > { %s430_s15 = sadd.s32 4294967295, %s645_s14   ;;  %p76_p0 = scmp.ne.s32.totalorder %s629_s10, %s625_s9  ;;  %s645_s14 = sphi %s676_s14, %s16_s14   ;;  %s641_s13 = sphi %s674_s13, %s813_s13   ;;  %s637_s12 = sphi %s672_s12, %s812_s12   ;;  %s633_s11 = sphi %s670_s11, %s811_s11   ;;  %s629_s10 = sphi %s668_s10, %s810_s10   ;;  %s625_s9 = sphi %s666_s9, %s809_s9  }
   0x6   : > { %p696_p1 = scmp.eq.s32.totalorder %s430_s15, 0  ;;  %p431_p2 = scmp.ge.s32.totalorder %s645_s14, 1 }
   0x7   : > { %p113_p3 = scmp.lt.s32.totalorder %s645_s14, 5  ;;  %s127_s20 = sshll.u32 %s802_s0, 4  ;;  %s128_s20 = int_to_ptr.hbm [resolvable:$true] %s127_s20 }
   0x8   : > { %p704_p4 = por %p696_p1, %p76_p0  ;;  %s647_s22 = smov [#allocation3]  }
   0x9   : > { %p711_p5 = pnand %p431_p2, %p113_p3  ;;  %s129_s23 = sshll.u32 %s647_s22, 4  ;;  %s130_s23 = int_to_ptr.vmem [resolvable:$true] %s129_s23 }
   0xa   : > { %s648_s24 = smov 128   ;;  %s649_s25 = smov 8  }
   0xb   : > { %p452_p6 = pneg %p711_p5  ;;  %s25_s26 = sadd.s32 1, %s641_s13 }
   0xc   : > { %p26_p8 = scmp.ge.s32.totalorder %s25_s26, 4  ;;  %p70_p9 = scmp.ne.s32.totalorder %s633_s11, %s629_s10 }
   0xd   : > { %p453_p7 = pnand %p452_p6, %p696_p1  ;;  %p71_p10 = scmp.eq.s32.totalorder %s645_s14, 0 }
   0xe   : > { %s815_s26 = smov (%p26_p8, %s25_s26), 0  ;;  %s63_s27 = sadd.s32 1, %s633_s11 }
   0xf   : > { %455 = dma.hbm_to_vmem [thread:$0]  (!%p453_p7), %s128_s20, 256, %s130_s23, [#allocation4], %s648_s24, %s648_s24, %s649_s25  }
  0x10   : > { %p726_p11 = por %p71_p10, %p70_p9  ;;  %s58_s29 = ssub.s32 %s641_s13, %s815_s26 }
  0x11   : > { %s143_s30 = sand.u32 1, %s633_s11   ;;  %p61_p12 = scmp.eq.s32.totalorder %s58_s29, 0 }
  0x12   : > { %p461_p13 = scmp.lt.s32.totalorder %s645_s14, 4  ;;  %s434_s3 = sshll.u32 %s143_s30, 4 }
  0x13   : > { %s445_s4 = sshll.u32 %s641_s13, 4  ;;  %s147_s15 = scalar_lea.vmem [#allocation5], %s434_s3 }
  0x14   : > { %s736_s5 = scalar_select %p61_p12, %s633_s11, %s63_s27  }
  0x15   : > { %s154_s8 = scalar_lea.hbm %s803_s1, %s445_s4  ;;  %s157_s18 = sshll.u32 %s147_s15, 4  ;;  %s158_s18 = int_to_ptr.vmem [resolvable:$true] %s157_s18 }
  0x16   : > { %s155_s9 = sshll.u32 %s154_s8, 4  ;;  %p457_p0 = pnand %p461_p13, %p726_p11  ;;  %s156_s9 = int_to_ptr.hbm [resolvable:$true] %s155_s9 }
  0x17   : > { %s144_s19 = scalar_lea.sflag [#allocation6], %s143_s30  ;;  %169 = sbr.rel (%p711_p5) target bundleno = 371 (0x173), region = 28 }
  0x18   : > { %459 = dma.hbm_to_vmem [thread:$0]  (!%p457_p0), %s156_s9, 256, %s158_s18, %s144_s19, %s648_s24, %s648_s24, %s649_s25  }
  0x1c   : > { %616 = dma.done.wait (%p696_p1), [#allocation4], 256  }
  0x1d   : > { %618 = vsyncadd (%p696_p1), [#allocation4], 4294967040  ;;  %s176_s20 = sand.u32 1, %s629_s10  }
  0x1e   : > { %s750_s22 = sshll.u32 %s176_s20, 4  ;;  %s177_s23 = scalar_lea.sflag [#allocation6], %s176_s20 }
  0x1f   : > { %s180_s27 = scalar_lea.vmem [#allocation5], %s750_s22 }
  0x20   : > { %620 = dma.done.wait (%p704_p4), %s177_s23, 256  }
  0x21   : > { %622 = vsyncadd (%p704_p4), %s177_s23, 4294967040  ;;  %p440_p2 = scmp.ne.s32.totalorder %s637_s12, 0 }
  0x23   : > { %213 = sbr.rel (%p440_p2) target bundleno = 191 (0xbf), region = 40 }
  0x28   : > { %v214_v0 = vld [vmem:[#allocation3] sm:$0xff]  ;;  %vm218_vm0 = vcmask 261120   ;;  %vm249_vm1 = vcmask 7168   ;;  %v650_v2 = vmov 0.0   ;;  %v215_v3 = vld [vmem:[#allocation3 + $0x8] sm:$0xff] }
  0x29   : > { %v216_v1 = vmul.f32 %v214_v0, %v214_v0  ;;  %252 = vst.msk [vmem:[%s804_s2] sm:$0xff] %vm249_vm1, %v650_v2  ;;  %v217_v5 = vmul.f32 %v215_v3, %v215_v3 }
  0x2a   : > { %253 = vst.msk [vmem:[%s804_s2 + $0x8] sm:$0xff] %vm249_vm1, %v650_v2 }
  0x2b   : > { %v219_v4 = vsel %vm218_vm0, %v216_v1, 0.0  ;;  %v222_v6 = vsel %vm218_vm0, %v217_v5, 0.0 }
  0x2c   : > { %220 = vadd.xlane.f32.xlu0 %v219_v4 }
  0x34   : > { %223 = vadd.xlane.f32.xlu0 %v222_v6 }
  0x9f   : > { %v221_v7 = vpop.xlane.xlu0 %220 }
  0xa0   : > { %515 = vrsqrt.f32 %v221_v7  ;;  %vm231_vm3 = vweird.f32 %v221_v7 }
  0xa6   : > { %v516_v8 = vpop.eup %515 }
  0xa7   : > { %v226_v9 = vmul.f32 %v516_v8, %v221_v7  ;;  %v224_v10 = vpop.xlane.xlu0 %223  ;;  %vm232_vm2 = vweird.f32 %v516_v8 }
  0xa8   : > { %517 = vrsqrt.f32 %v224_v10  ;;  %vm233_vm4 = vmor %vm231_vm3, %vm232_vm2  ;;  %vm241_vm6 = vweird.f32 %v224_v10 }
  0xa9   : > { %v227_v11 = vmul.f32 %v516_v8, %v226_v9 }
  0xab   : > { %v228_v12 = vmul.f32 0.5, %v227_v11 }
  0xad   : > { %v229_v13 = vsub.f32 1.5, %v228_v12 }
  0xae   : > { %v518_v14 = vpop.eup %517 }
  0xaf   : > { %v230_v15 = vmul.f32 %v516_v8, %v229_v13  ;;  %v236_v16 = vmul.f32 %v518_v14, %v224_v10  ;;  %vm242_vm5 = vweird.f32 %v518_v14 }
  0xb0   : > { %vm243_vm7 = vmor %vm241_vm6, %vm242_vm5 }
  0xb1   : > { %v234_v17 = vsel %vm233_vm4, %v516_v8, %v230_v15  ;;  %v237_v18 = vmul.f32 %v518_v14, %v236_v16 }
  0xb2   : > { %v245_v19 = vmin.f32 %v234_v17, 1000000.0 }
  0xb3   : > { %v238_v20 = vmul.f32 0.5, %v237_v18 }
  0xb4   : > { %v247_v21 = vmul.f32 10.0, %v245_v19 }
  0xb5   : > { %v239_v22 = vsub.f32 1.5, %v238_v20 }
  0xb6   : > { %250 = vst.msk [vmem:[#allocation2] sm:$0xff] %vm249_vm1, %v247_v21 }
  0xb7   : > { %v240_v23 = vmul.f32 %v518_v14, %v239_v22 }
  0xb9   : > { %v244_v24 = vsel %vm243_vm7, %v518_v14, %v240_v23 }
  0xba   : > { %v246_v25 = vmin.f32 %v244_v24, 1000000.0 }
  0xbc   : > { %v248_v26 = vmul.f32 10.0, %v246_v25 }
  0xbe   : > { %251 = vst.msk [vmem:[#allocation2 + $0x8] sm:$0xff] %vm249_vm1, %v248_v26 }
  0xbf PF: > { %v260_v27 = vld [vmem:[%s180_s27] sm:$0xff]  ;;  %vm264_vm8 = vcmask 261120   ;;  %v261_v31 = vld [vmem:[%s180_s27 + $0x8] sm:$0xff]  ;;  %vm337_vm0 = vcmask 7168  }
  0xc0   : > { %v256_v28 = vld [vmem:[#allocation3] sm:$0xff]  ;;  %v271_v29 = vmul.f32 %v260_v27, %v260_v27  ;;  %v257_v32 = vld [vmem:[#allocation3 + $0x8] sm:$0xff]  ;;  %v272_v35 = vmul.f32 %v261_v31, %v261_v31  ;;  %v258_v47 = vld [vmem:[#allocation2] sm:$0xff] }
  0xc1   : > { %v262_v30 = vmul.f32 %v260_v27, %v256_v28  ;;  %v263_v36 = vmul.f32 %v261_v31, %v257_v32  ;;  %v254_v19 = vld [vmem:[%s804_s2] sm:$0xff] }
  0xc2   : > { %v273_v33 = vsel %vm264_vm8, %v271_v29, 0.0  ;;  %v276_v37 = vsel %vm264_vm8, %v272_v35, 0.0  ;;  %v255_v29 = vld [vmem:[%s804_s2 + $0x8] sm:$0xff] }
  0xc3   : > { %v265_v34 = vsel %vm264_vm8, %v262_v30, 0.0  ;;  %274 = vadd.xlane.f32.xlu0 %v273_v33  ;;  %v268_v38 = vsel %vm264_vm8, %v263_v36, 0.0 }
  0xc4   : > { %266 = vadd.xlane.f32.xlu1 %v265_v34 }
  0xc5   : > { %v259_v58 = vld [vmem:[#allocation2 + $0x8] sm:$0xff] }
  0xcb   : > { %277 = vadd.xlane.f32.xlu0 %v276_v37 }
  0xcc   : > { %269 = vadd.xlane.f32.xlu1 %v268_v38 }
 0x136   : > { %v275_v39 = vpop.xlane.xlu0 %274 }
 0x137   : > { %519 = vrsqrt.f32 %v275_v39  ;;  %v267_v45 = vpop.xlane.xlu1 %266  ;;  %vm287_vm10 = vweird.f32 %v275_v39 }
 0x138   : > { %v279_v51 = vmul.f32 %v267_v45, %v258_v47 }
 0x13d   : > { %v520_v40 = vpop.eup %519 }
 0x13e   : > { %v282_v41 = vmul.f32 %v520_v40, %v275_v39  ;;  %v278_v42 = vpop.xlane.xlu0 %277  ;;  %vm288_vm9 = vweird.f32 %v520_v40 }
 0x13f   : > { %521 = vrsqrt.f32 %v278_v42  ;;  %vm289_vm11 = vmor %vm287_vm10, %vm288_vm9  ;;  %v270_v59 = vpop.xlane.xlu1 %269  ;;  %vm297_vm13 = vweird.f32 %v278_v42 }
 0x140   : > { %v283_v43 = vmul.f32 %v520_v40, %v282_v41  ;;  %v280_v63 = vmul.f32 %v270_v59, %v259_v58 }
 0x142   : > { %v284_v44 = vmul.f32 0.5, %v283_v43 }
 0x144   : > { %v285_v46 = vsub.f32 1.5, %v284_v44 }
 0x145   : > { %v522_v48 = vpop.eup %521 }
 0x146   : > { %v286_v49 = vmul.f32 %v520_v40, %v285_v46  ;;  %v292_v50 = vmul.f32 %v522_v48, %v278_v42  ;;  %vm298_vm12 = vweird.f32 %v522_v48 }
 0x147   : > { %vm299_vm14 = vmor %vm297_vm13, %vm298_vm12 }
 0x148   : > { %v293_v52 = vmul.f32 %v522_v48, %v292_v50  ;;  %v290_v53 = vsel %vm289_vm11, %v520_v40, %v286_v49 }
 0x149   : > { %v301_v54 = vmin.f32 %v290_v53, 1000000.0 }
 0x14a   : > { %v294_v55 = vmul.f32 0.5, %v293_v52 }
 0x14b   : > { %v303_v56 = vmul.f32 %v301_v54, %v279_v51 }
 0x14c   : > { %v295_v57 = vsub.f32 1.5, %v294_v55 }
 0x14d   : > { %v307_v60 = vand.u32 2147483647, %v303_v56  ;;  %v305_v18 = vmax.f32 %v303_v56, 0.0 }
 0x14e   : > { %v296_v61 = vmul.f32 %v522_v48, %v295_v57 }
 0x14f   : > { %v309_v62 = vsub.f32 0.0, %v307_v60 }
 0x150   : > { %v300_v0 = vsel %vm299_vm14, %v522_v48, %v296_v61 }
 0x151   : > { %v311_v1 = vmul.f32 1.442695, %v309_v62  ;;  %v302_v2 = vmin.f32 %v300_v0, 1000000.0 }
 0x153   : > { %523 = vpow2.f32 %v311_v1  ;;  %v304_v3 = vmul.f32 %v302_v2, %v280_v63 }
 0x155   : > { %v308_v4 = vand.u32 2147483647, %v304_v3  ;;  %v306_v28 = vmax.f32 %v304_v3, 0.0 }
 0x157   : > { %v310_v5 = vsub.f32 0.0, %v308_v4 }
 0x159   : > { %v524_v6 = vpop.eup %523  ;;  %v313_v7 = vmul.f32 1.442695, %v310_v5 }
 0x15a   : > { %v315_v8 = vadd.f32 1.0, %v524_v6  ;;  %v318_v9 = vmul.f32 -0.5, %v524_v6  ;;  %v321_v11 = vand.u32 2147483647, %v524_v6 }
 0x15b   : > { %525 = vpow2.f32 %v313_v7 }
 0x15c   : > { %527 = vlog2.f32 %v315_v8  ;;  %v319_v10 = vadd.f32 1.0, %v318_v9  ;;  %vm322_vm15 = vcmp.lt.f32.partialorder %v321_v11, 0.0004427343 }
 0x15e   : > { %v320_v16 = vmul.f32 %v524_v6, %v319_v10 }
 0x161   : > { %v526_v12 = vpop.eup %525 }
 0x162   : > { %v528_v13 = vpop.eup %527  ;;  %v324_v14 = vadd.f32 1.0, %v526_v12  ;;  %v327_v17 = vmul.f32 -0.5, %v526_v12  ;;  %v330_v24 = vand.u32 2147483647, %v526_v12 }
 0x163   : > { %v317_v15 = vmul.f32 0.6931472, %v528_v13 }
 0x164   : > { %529 = vlog2.f32 %v324_v14  ;;  %v328_v22 = vadd.f32 1.0, %v327_v17  ;;  %vm331_vm1 = vcmp.lt.f32.partialorder %v330_v24, 0.0004427343 }
 0x165   : > { %v323_v20 = vsel %vm322_vm15, %v320_v16, %v317_v15 }
 0x166   : > { %v333_v21 = vadd.f32 %v323_v20, %v305_v18  ;;  %v329_v27 = vmul.f32 %v526_v12, %v328_v22 }
 0x168   : > { %v335_v23 = vadd.f32 %v333_v21, %v254_v19 }
 0x16a   : > { %v530_v25 = vpop.eup %529  ;;  %338 = vst.msk [vmem:[%s804_s2] sm:$0xff] %vm337_vm0, %v335_v23 }
 0x16b   : > { %v326_v26 = vmul.f32 0.6931472, %v530_v25 }
 0x16d   : > { %v332_v30 = vsel %vm331_vm1, %v329_v27, %v326_v26 }
 0x16e   : > { %v334_v31 = vadd.f32 %v332_v30, %v306_v28 }
 0x170   : > { %v336_v32 = vadd.f32 %v334_v31, %v255_v29 }
 0x172   : > { %339 = vst.msk [vmem:[%s804_s2 + $0x8] sm:$0xff] %vm337_vm0, %v336_v32 }
 0x173 PF: > { %s16_s14 = sadd.s32 1, %s645_s14   ;;  %s809_s9 = smov %s629_s10 }
 0x174   : > { %p13_p1 = scmp.ge.s32.totalorder %s16_s14, 6   ;;  %s810_s10 = smov %s633_s11 }
 0x175   : > { %s811_s11 = smov %s736_s5  ;;  %s812_s12 = smov %s641_s13 }
 0x176   : > { %s813_s13 = smov %s815_s26  ;;  %15 = sbr.rel (!%p13_p1) target bundleno = 5 (0x5), region = 78 }
 0x17b   :  { %362 = vsyncpa [#allocation4], 1 }
 0x17c   :  { %364 = vsyncpa [#allocation4 + $0x1], 1 }
 0x17d   :  { %365 = vsyncpa [#allocation6], 1 }
 0x17e   :  { %367 = vsyncpa [#allocation6 + $0x1], 1 }

</bundles_post_ra>
